<compile_context>
chip_gen: v7x
topology: tpu7x:2x2x1
jax: 0.10.0
libtpu: 0.0.40
codegen_flags: <defaults>
</compile_context>

<pallas_src>
from functools import partial

import jax
import jax.numpy as jnp
from jax.experimental import pallas as pl
from jax.experimental.pallas import tpu as pltpu


def _round_up(x, m):
    return (x + m - 1) // m * m


def mlp_kernel(x_ref, w1_ref, b1_ref, w2_ref, b2_ref, w3_ref, b3_ref, o_ref):
    # All matmuls use f32 operands with f32 accumulation (nn.Linear semantics).
    # Layer 1: (tile_b, 784) @ (784, 32), +bias, ReLU.
    h = jnp.dot(x_ref[...], w1_ref[...], preferred_element_type=jnp.float32)
    h = jnp.maximum(h + b1_ref[...], 0.0)
    # Layer 2: (tile_b, 32) @ (32, 32), +bias, ReLU.
    h = jnp.dot(h, w2_ref[...], preferred_element_type=jnp.float32)
    h = jnp.maximum(h + b2_ref[...], 0.0)
    # Layer 3 (logits): (tile_b, 32) @ (32, 10), +bias, no activation.
    o = jnp.dot(h, w3_ref[...], preferred_element_type=jnp.float32)
    o_ref[...] = (o + b3_ref[...]).astype(o_ref.dtype)


def mnist_mlp_forward(x_nchw, params, tile_b=2048):
    """x_nchw: (B, 1, 28, 28) float32. Returns float32 logits (B, 10)."""
    w1, b1, w2, b2, w3, b3 = params
    B = x_nchw.shape[0]

    # torch's x.view(-1, 784): free bitcast, no dtype change, no HBM copy.
    x = x_nchw.reshape(B, 784)

    # Batch tile: multiple of 8 sublanes, capped at round_up(B, 8).
    tile_b = max(8, min(_round_up(tile_b, 8), _round_up(B, 8)))
    grid = (pl.cdiv(B, tile_b),)  # ragged last block; no jnp.pad copy.

    # Weights/biases: full block, constant index_map -> VMEM-resident across
    # the whole grid, single-buffered (they never change per step).
    def resident(shape):
        return pl.BlockSpec(shape, lambda i: (0,) * len(shape),
                            pipeline_mode=pl.Buffered(1))

    return pl.pallas_call(
        mlp_kernel,
        out_shape=jax.ShapeDtypeStruct((B, 10), jnp.float32),
        grid_spec=pl.GridSpec(
            grid=grid,
            in_specs=[
                pl.BlockSpec((tile_b, 784), lambda i: (i, 0)),  # streamed x tile
                resident(w1.shape), resident(b1.shape),
                resident(w2.shape), resident(b2.shape),
                resident(w3.shape), resident(b3.shape),
            ],
            out_specs=pl.BlockSpec((tile_b, 10), lambda i: (i, 0)),
        ),
        compiler_params=pltpu.CompilerParams(
            dimension_semantics=("parallel",),   # shard batch axis across TCs
            vmem_limit_bytes=32 * 1024 * 1024,   # 2048x784 f32, double-buffered
        ),
    )(x, w1, b1, w2, b2, w3, b3)


def init_params(key):
    """Deterministic init mimicking nn.Linear (uniform +/- 1/sqrt(fan_in)).
    Weights stored as (in_features, out_features) (= nn.Linear.weight.T)."""
    dims = [(784, 32), (32, 32), (32, 10)]
    params = []
    for i, (fan_in, fan_out) in enumerate(dims):
        kw, kb = jax.random.split(jax.random.fold_in(key, i))
        bound = 1.0 / jnp.sqrt(float(fan_in))
        w = jax.random.uniform(kw, (fan_in, fan_out), jnp.float32, -bound, bound)
        b = jax.random.uniform(kb, (1, fan_out), jnp.float32, -bound, bound)
        params += [w, b]
    return tuple(params)


def reference_forward_f32(x_nchw, params):
    """Full-f32 reference with HIGHEST matmul precision (PyTorch semantics)."""
    w1, b1, w2, b2, w3, b3 = params
    x = x_nchw.reshape(x_nchw.shape[0], 784).astype(jnp.float32)
    dot = partial(jnp.dot, precision=jax.lax.Precision.HIGHEST)
    h = jnp.maximum(dot(x, w1) + b1, 0.0)
    h = jnp.maximum(dot(h, w2) + b2, 0.0)
    return dot(h, w3) + b3


if __name__ == "__main__":
    key = jax.random.PRNGKey(0)
    k_x1, k_x2, k_p = jax.random.split(key, 3)
    params = init_params(k_p)

    fwd = jax.jit(mnist_mlp_forward, static_argnames=("tile_b",))

    # Case 1: multi-step grid with a ragged last block (72 = 2*32 + 8),
    # exercises the no-pad path.
    B1 = 72
    x1 = jax.random.normal(k_x1, (B1, 1, 28, 28), dtype=jnp.float32)
    out1 = jax.block_until_ready(fwd(x1, params, tile_b=32))
    assert out1.shape == (B1, 10)
    ref1 = reference_forward_f32(x1, params)
    assert jnp.allclose(out1, ref1, atol=1e-2, rtol=1e-2), \
        "mismatch vs f32 reference (case 1)"

    # Case 2: tiny batch, default tile (tile capped to B, single grid step).
    B2 = 8
    x2 = jax.random.normal(k_x2, (B2, 1, 28, 28), dtype=jnp.float32)
    out2 = jax.block_until_ready(fwd(x2, params))
    assert out2.shape == (B2, 10)
    ref2 = reference_forward_f32(x2, params)
    assert jnp.allclose(out2, ref2, atol=1e-2, rtol=1e-2), \
        "mismatch vs f32 reference (case 2)"

    print("KERNEL_OK")
</pallas_src>

<mosaic_0001>
module attributes {stable_mosaic.version = 11 : i64} {
  func.func @mlp_kernel(%arg0: i32, %arg1: memref<32x784xf32, #tpu.memory_space<vmem>>, %arg2: memref<784x32xf32, #tpu.memory_space<vmem>>, %arg3: memref<1x32xf32, #tpu.memory_space<vmem>>, %arg4: memref<32x32xf32, #tpu.memory_space<vmem>>, %arg5: memref<1x32xf32, #tpu.memory_space<vmem>>, %arg6: memref<32x10xf32, #tpu.memory_space<vmem>>, %arg7: memref<1x10xf32, #tpu.memory_space<vmem>>, %arg8: memref<32x10xf32, #tpu.memory_space<vmem>>) attributes {dimension_semantics = [#tpu.dimension_semantics<parallel>], iteration_bounds = array<i64: 3>, scalar_prefetch = 0 : i64, scratch_operands = 0 : i64, tpu.core_type = #tpu.core_type<tc>, window_params = [{transform_indices = @transform_0, window_bounds = array<i64: 32, 784>}, {pipeline_mode = #tpu.pipeline_mode<synchronous>, transform_indices = @transform_1, window_bounds = array<i64: 784, 32>}, {pipeline_mode = #tpu.pipeline_mode<synchronous>, transform_indices = @transform_2, window_bounds = array<i64: 1, 32>}, {pipeline_mode = #tpu.pipeline_mode<synchronous>, transform_indices = @transform_3, window_bounds = array<i64: 32, 32>}, {pipeline_mode = #tpu.pipeline_mode<synchronous>, transform_indices = @transform_4, window_bounds = array<i64: 1, 32>}, {pipeline_mode = #tpu.pipeline_mode<synchronous>, transform_indices = @transform_5, window_bounds = array<i64: 32, 10>}, {pipeline_mode = #tpu.pipeline_mode<synchronous>, transform_indices = @transform_6, window_bounds = array<i64: 1, 10>}, {transform_indices = @transform_7, window_bounds = array<i64: 32, 10>}]} {
    %c0 = arith.constant 0 : index
    %c0_0 = arith.constant 0 : index
    %0 = vector.load %arg1[%c0, %c0_0] : memref<32x784xf32, #tpu.memory_space<vmem>>, vector<32x784xf32>
    %c0_1 = arith.constant 0 : index
    %c0_2 = arith.constant 0 : index
    %1 = vector.load %arg2[%c0_1, %c0_2] : memref<784x32xf32, #tpu.memory_space<vmem>>, vector<784x32xf32>
    %cst = arith.constant dense<0.000000e+00> : vector<32x32xf32>
    %2 = tpu.matmul %0, %1, %cst {dimension_numbers = #tpu.dot_dimension_numbers<[1], [0], [0], [1], [0, 0, 1, 1], [], []>} : vector<32x784xf32>, vector<784x32xf32>, vector<32x32xf32> -> vector<32x32xf32>
    %c0_3 = arith.constant 0 : index
    %c0_4 = arith.constant 0 : index
    %3 = vector.load %arg3[%c0_3, %c0_4] : memref<1x32xf32, #tpu.memory_space<vmem>>, vector<1x32xf32>
    %4 = vector.broadcast %3 : vector<1x32xf32> to vector<32x32xf32>
    %5 = arith.addf %2, %4 : vector<32x32xf32>
    %cst_5 = arith.constant 0.000000e+00 : f32
    %6 = vector.broadcast %cst_5 : f32 to vector<32x32xf32>
    %7 = arith.maximumf %5, %6 : vector<32x32xf32>
    %c0_6 = arith.constant 0 : index
    %c0_7 = arith.constant 0 : index
    %8 = vector.load %arg4[%c0_6, %c0_7] : memref<32x32xf32, #tpu.memory_space<vmem>>, vector<32x32xf32>
    %cst_8 = arith.constant dense<0.000000e+00> : vector<32x32xf32>
    %9 = tpu.matmul %7, %8, %cst_8 {dimension_numbers = #tpu.dot_dimension_numbers<[1], [0], [0], [1], [0, 0, 1, 1], [], []>} : vector<32x32xf32>, vector<32x32xf32>, vector<32x32xf32> -> vector<32x32xf32>
    %c0_9 = arith.constant 0 : index
    %c0_10 = arith.constant 0 : index
    %10 = vector.load %arg5[%c0_9, %c0_10] : memref<1x32xf32, #tpu.memory_space<vmem>>, vector<1x32xf32>
    %11 = vector.broadcast %10 : vector<1x32xf32> to vector<32x32xf32>
    %12 = arith.addf %9, %11 : vector<32x32xf32>
    %cst_11 = arith.constant 0.000000e+00 : f32
    %13 = vector.broadcast %cst_11 : f32 to vector<32x32xf32>
    %14 = arith.maximumf %12, %13 : vector<32x32xf32>
    %c0_12 = arith.constant 0 : index
    %c0_13 = arith.constant 0 : index
    %15 = vector.load %arg6[%c0_12, %c0_13] : memref<32x10xf32, #tpu.memory_space<vmem>>, vector<32x10xf32>
    %cst_14 = arith.constant dense<0.000000e+00> : vector<32x10xf32>
    %16 = tpu.matmul %14, %15, %cst_14 {dimension_numbers = #tpu.dot_dimension_numbers<[1], [0], [0], [1], [0, 0, 1, 1], [], []>} : vector<32x32xf32>, vector<32x10xf32>, vector<32x10xf32> -> vector<32x10xf32>
    %c0_15 = arith.constant 0 : index
    %c0_16 = arith.constant 0 : index
    %17 = vector.load %arg7[%c0_15, %c0_16] : memref<1x10xf32, #tpu.memory_space<vmem>>, vector<1x10xf32>
    %18 = vector.broadcast %17 : vector<1x10xf32> to vector<32x10xf32>
    %19 = arith.addf %16, %18 : vector<32x10xf32>
    %c0_17 = arith.constant 0 : index
    %c0_18 = arith.constant 0 : index
    %20 = vector.load %arg8[%c0_17, %c0_18] : memref<32x10xf32, #tpu.memory_space<vmem>>, vector<32x10xf32>
    tpu.vector_store %arg8[%c0_17, %c0_18], %19 {strides = array<i32>} : memref<32x10xf32, #tpu.memory_space<vmem>>, vector<32x10xf32>,
    return
  }
  func.func @transform_0(%arg0: i32) -> (i32, i32) {
    %c0_i32 = arith.constant 0 : i32
    %c0_i32_0 = arith.constant 0 : i32
    return %arg0, %c0_i32 : i32, i32
  }
  func.func @transform_1(%arg0: i32) -> (i32, i32) {
    %c0_i32 = arith.constant 0 : i32
    %c0_i32_0 = arith.constant 0 : i32
    %c0_i32_1 = arith.constant 0 : i32
    return %c0_i32, %c0_i32_0 : i32, i32
  }
  func.func @transform_2(%arg0: i32) -> (i32, i32) {
    %c0_i32 = arith.constant 0 : i32
    %c0_i32_0 = arith.constant 0 : i32
    %c0_i32_1 = arith.constant 0 : i32
    return %c0_i32, %c0_i32_0 : i32, i32
  }
  func.func @transform_3(%arg0: i32) -> (i32, i32) {
    %c0_i32 = arith.constant 0 : i32
    %c0_i32_0 = arith.constant 0 : i32
    %c0_i32_1 = arith.constant 0 : i32
    return %c0_i32, %c0_i32_0 : i32, i32
  }
  func.func @transform_4(%arg0: i32) -> (i32, i32) {
    %c0_i32 = arith.constant 0 : i32
    %c0_i32_0 = arith.constant 0 : i32
    %c0_i32_1 = arith.constant 0 : i32
    return %c0_i32, %c0_i32_0 : i32, i32
  }
  func.func @transform_5(%arg0: i32) -> (i32, i32) {
    %c0_i32 = arith.constant 0 : i32
    %c0_i32_0 = arith.constant 0 : i32
    %c0_i32_1 = arith.constant 0 : i32
    return %c0_i32, %c0_i32_0 : i32, i32
  }
  func.func @transform_6(%arg0: i32) -> (i32, i32) {
    %c0_i32 = arith.constant 0 : i32
    %c0_i32_0 = arith.constant 0 : i32
    %c0_i32_1 = arith.constant 0 : i32
    return %c0_i32, %c0_i32_0 : i32, i32
  }
  func.func @transform_7(%arg0: i32) -> (i32, i32) {
    %c0_i32 = arith.constant 0 : i32
    %c0_i32_0 = arith.constant 0 : i32
    return %arg0, %c0_i32 : i32, i32
  }
}

</mosaic_0001>

<bundles_post_ra>
// kernel: mnist_mlp_forward.1
= control target key start
LH: loop header
LB: loop body
LE: loop exit
PB: predicated region body
PF: predicated region fallthrough
CT: control target
= control target key end

     0   :  { %s1818_s24 = smov 0   ;;  %s1820_s25 = smov 0   ;;  %s2292_s0 = inlined_call_operand.vmem [shape: f32[72,784], index: 0, kind: input, shape index: {}]   ;;  %s2293_s1 = inlined_call_operand.vmem [shape: f32[784,32], index: 1, kind: input, shape index: {}]   ;;  %s2294_s2 = inlined_call_operand.vmem [shape: f32[1,32], index: 2, kind: input, shape index: {}]   ;;  %s2295_s3 = inlined_call_operand.vmem [shape: f32[32,32], index: 3, kind: input, shape index: {}]   ;;  %s2296_s4 = inlined_call_operand.vmem [shape: f32[1,32], index: 4, kind: input, shape index: {}]   ;;  %s2297_s5 = inlined_call_operand.vmem [shape: f32[32,10], index: 5, kind: input, shape index: {}]   ;;  %s2298_s6 = inlined_call_operand.vmem [shape: f32[1,10], index: 6, kind: input, shape index: {}]   ;;  %s2299_s7 = inlined_call_operand.vmem [shape: f32[72,10], index: 7, kind: output, shape index: {}]  }
   0x1   :  { %s1822_s26 = smov 0  }
   0x2 LB: > { %s1831_s27 = sadd.s32 4294967295, %s1744_s26   ;;  %s1833_s28 = sadd.s32 1, %s1744_s26   ;;  %s1744_s26 = sphi %s1822_s26, %s2306_s26   ;;  %s1740_s25 = sphi %s1820_s25, %s2305_s25   ;;  %s1736_s24 = sphi %s1818_s24, %s2304_s24  }
   0x3   : > { %s173_s29 = ssub.s32 %s1744_s26, %s1833_s28  ;;  %s176_s30 = sadd.s32 1, %s1740_s25 }
   0x4   : > { %p174_p0 = scmp.eq.s32.totalorder %s173_s29, 0  ;;  %p186_p1 = scmp.ne.s32.totalorder %s1740_s25, %s1736_s24 }
   0x5   : > { %p187_p2 = scmp.eq.s32.totalorder %s1831_s27, 2  ;;  %p1254_p3 = scmp.ge.s32.totalorder %s1744_s26, 1 }
   0x6   : > { %s1841_s8 = scalar_select %p174_p0, %s1740_s25, %s176_s30  }
   0x7   : > { %p1843_p4 = por %p187_p2, %p186_p1  ;;  %p249_p5 = scmp.lt.s32.totalorder %s1744_s26, 4 }
   0x9   : > { %p250_p6 = pnand %p1254_p3, %p249_p5 }
   0xa   : > { %v352_v0 = vld [vmem:[%s2293_s1 + $0x80] sm:$0xff] (!%p250_p6)  ;;  %v353_v1 = vld [vmem:[%s2293_s1 + $0x88] sm:$0xff] (!%p250_p6)  ;;  %v354_v11 = vld [vmem:[%s2293_s1 + $0x90] sm:$0xff] (!%p250_p6)  ;;  %s1875_s11 = sshll.u32 (!%p250_p6), %s1831_s27, 2  ;;  %vm441_vm0 = vcmask (!%p250_p6), 130048   ;;  %vm809_vm1 = vcmask (!%p250_p6), 261120  }
   0xb   : > { %253 = sbr.rel (%p250_p6) target bundleno = 793 (0x319), region = 48  ;;  %v336_v2 = vld [vmem:[%s2293_s1] sm:$0xff] (!%p250_p6)  ;;  %v1485_v3 = vpack.c.bf16 (!%p250_p6), %v353_v1, %v352_v0  ;;  %v337_v4 = vld [vmem:[%s2293_s1 + $0x8] sm:$0xff] (!%p250_p6)  ;;  %v355_v13 = vld [vmem:[%s2293_s1 + $0x98] sm:$0xff] (!%p250_p6)  ;;  %p292_p7 = scmp.lt.s32.totalorder (!%p250_p6), %s1875_s11, 8  ;;  %vm1019_vm2 = vcmask (!%p250_p6), 80896  }
   0xc   : > { %v384_v5 = vld [vmem:[%s2293_s1 + $0x180] sm:$0xff] (!%p250_p6)  ;;  %v385_v6 = vld [vmem:[%s2293_s1 + $0x188] sm:$0xff] (!%p250_p6)  ;;  %v1487_v7 = vpack.c.bf16 (!%p250_p6), %v337_v4, %v336_v2  ;;  %v338_v14 = vld [vmem:[%s2293_s1 + $0x10] sm:$0xff] (!%p250_p6)  ;;  %v1489_v16 = vpack.c.bf16 (!%p250_p6), %v355_v13, %v354_v11  ;;  %s283_s16 = sand.u32 (!%p250_p6), 1, %s1736_s24  }
   0xd   : > { %v1517_v8 = vpack.c.bf16 (!%p250_p6), %v385_v6, %v384_v5  ;;  %v368_v9 = vld [vmem:[%s2293_s1 + $0x100] sm:$0xff] (!%p250_p6)  ;;  %v369_v10 = vld [vmem:[%s2293_s1 + $0x108] sm:$0xff] (!%p250_p6)  ;;  %1486 = vmatprep.subr.bf16.mxu0 (!%p250_p6), %v1485_v3  ;;  %v339_v15 = vld [vmem:[%s2293_s1 + $0x18] sm:$0xff] (!%p250_p6)  ;;  %s1255_s17 = sshll.u32 (!%p250_p6), %s283_s16, 5 }
   0xe   : > { %v1519_v12 = vpack.c.bf16 (!%p250_p6), %v369_v10, %v368_v9  ;;  %1488 = vmatpush3.bf16.msra.mxu0 (!%p250_p6), %v1487_v7  ;;  %v1491_v17 = vpack.c.bf16 (!%p250_p6), %v339_v15, %v338_v14  ;;  %v386_v18 = vld [vmem:[%s2293_s1 + $0x190] sm:$0xff] (!%p250_p6)  ;;  %v387_v19 = vld [vmem:[%s2293_s1 + $0x198] sm:$0xff] (!%p250_p6)  ;;  %v356_v23 = vld [vmem:[%s2293_s1 + $0xa0] sm:$0xff] (!%p250_p6) }
   0xf   : > { %1518 = vmatprep.subr.bf16.mxu1 (!%p250_p6), %v1517_v8  ;;  %v370_v20 = vld [vmem:[%s2293_s1 + $0x110] sm:$0xff] (!%p250_p6)  ;;  %v1521_v21 = vpack.c.bf16 (!%p250_p6), %v387_v19, %v386_v18  ;;  %v371_v22 = vld [vmem:[%s2293_s1 + $0x118] sm:$0xff] (!%p250_p6)  ;;  %v357_v24 = vld [vmem:[%s2293_s1 + $0xa8] sm:$0xff] (!%p250_p6)  ;;  %1490 = vmatprep.subr.bf16.mxu0 (!%p250_p6), %v1489_v16 }
  0x10   : > { %1520 = vmatpush3.bf16.msra.mxu1 (!%p250_p6), %v1519_v12  ;;  %v1523_v25 = vpack.c.bf16 (!%p250_p6), %v371_v22, %v370_v20  ;;  %v1493_v26 = vpack.c.bf16 (!%p250_p6), %v357_v24, %v356_v23  ;;  %v340_v27 = vld [vmem:[%s2293_s1 + $0x20] sm:$0xff] (!%p250_p6)  ;;  %v341_v28 = vld [vmem:[%s2293_s1 + $0x28] sm:$0xff] (!%p250_p6)  ;;  %v358_v35 = vld [vmem:[%s2293_s1 + $0xb0] sm:$0xff] (!%p250_p6) }
  0x11   : > { %v388_v29 = vld [vmem:[%s2293_s1 + $0x1a0] sm:$0xff] (!%p250_p6)  ;;  %1522 = vmatprep.subr.bf16.mxu1 (!%p250_p6), %v1521_v21  ;;  %v389_v30 = vld [vmem:[%s2293_s1 + $0x1a8] sm:$0xff] (!%p250_p6)  ;;  %v1495_v33 = vpack.c.bf16 (!%p250_p6), %v341_v28, %v340_v27  ;;  %v359_v36 = vld [vmem:[%s2293_s1 + $0xb8] sm:$0xff] (!%p250_p6) }
  0x12   : > { %v372_v31 = vld [vmem:[%s2293_s1 + $0x120] sm:$0xff]  ;;  %v373_v32 = vld [vmem:[%s2293_s1 + $0x128] sm:$0xff]  ;;  %1492 = vmatpush3.bf16.msra.mxu0 %v1491_v17  ;;  %v1525_v34 = vpack.c.bf16 %v389_v30, %v388_v29  ;;  %v342_v37 = vld [vmem:[%s2293_s1 + $0x30] sm:$0xff]  ;;  %v1497_v39 = vpack.c.bf16 %v359_v36, %v358_v35  ;;  %s1944_s22 = scalar_select %p292_p7, %s1875_s11, 8 }
  0x13   : > { %1494 = vmatprep.subr.bf16.mxu0 %v1493_v26  ;;  %v1527_v38 = vpack.c.bf16 %v373_v32, %v372_v31  ;;  %v343_v40 = vld [vmem:[%s2293_s1 + $0x38] sm:$0xff]  ;;  %v390_v41 = vld [vmem:[%s2293_s1 + $0x1b0] sm:$0xff]  ;;  %v360_v46 = vld [vmem:[%s2293_s1 + $0xc0] sm:$0xff]  ;;  %s1032_s24 = ssub.s32 (%p1843_p4), 9, %s1875_s11 }
  0x14   : > { %1524 = vmatpush3.bf16.msra.mxu1 %v1523_v25  ;;  %v391_v42 = vld [vmem:[%s2293_s1 + $0x1b8] sm:$0xff]  ;;  %v374_v44 = vld [vmem:[%s2293_s1 + $0x130] sm:$0xff]  ;;  %v361_v47 = vld [vmem:[%s2293_s1 + $0xc8] sm:$0xff]  ;;  %v1499_v48 = vpack.c.bf16 %v343_v40, %v342_v37  ;;  %s1601_s30 = smul.u32 56, %s1944_s22  ;;  %s1290_s22 = sshll.u32 (%p1843_p4), %s1831_s27, 5 }
  0x15   : > { %1526 = vmatprep.subr.bf16.mxu1 %v1525_v34  ;;  %v1529_v43 = vpack.c.bf16 %v391_v42, %v390_v41  ;;  %v375_v45 = vld [vmem:[%s2293_s1 + $0x138] sm:$0xff]  ;;  %v392_v49 = vld [vmem:[%s2293_s1 + $0x1c0] sm:$0xff]  ;;  %v393_v50 = vld [vmem:[%s2293_s1 + $0x1c8] sm:$0xff]  ;;  %v1501_v52 = vpack.c.bf16 %v361_v47, %v360_v46  ;;  %p1033_p8 = scmp.lt.s32.totalorder (%p1843_p4), %s1032_s24, 4 }
  0x16   : > { %1496 = vmatpush3.bf16.msra.mxu0 %v1495_v33  ;;  %v1531_v51 = vpack.c.bf16 %v375_v45, %v374_v44  ;;  %v344_v53 = vld [vmem:[%s2293_s1 + $0x40] sm:$0xff]  ;;  %v345_v54 = vld [vmem:[%s2293_s1 + $0x48] sm:$0xff]  ;;  %v1533_v56 = vpack.c.bf16 %v393_v50, %v392_v49  ;;  %v362_v58 = vld [vmem:[%s2293_s1 + $0xd0] sm:$0xff]  ;;  %s2001_s14 = scalar_lea.vmem %s2292_s0, %s1601_s30  ;;  %s2243_s30 = scalar_lea.vmem (%p1843_p4), %s2299_s7, %s1290_s22  }
  0x17   : > { %1498 = vmatprep.subr.bf16.mxu0 %v1497_v39  ;;  %v376_v55 = vld [vmem:[%s2293_s1 + $0x140] sm:$0xff]  ;;  %v377_v57 = vld [vmem:[%s2293_s1 + $0x148] sm:$0xff]  ;;  %v363_v59 = vld [vmem:[%s2293_s1 + $0xd8] sm:$0xff]  ;;  %v1503_v62 = vpack.c.bf16 %v345_v54, %v344_v53 }
  0x18   : > { %1528 = vmatpush3.bf16.msra.mxu1 %v1527_v38  ;;  %v394_v60 = vld [vmem:[%s2293_s1 + $0x1d0] sm:$0xff]  ;;  %v395_v61 = vld [vmem:[%s2293_s1 + $0x1d8] sm:$0xff]  ;;  %v1535_v63 = vpack.c.bf16 %v377_v57, %v376_v55  ;;  %v1505_v0 = vpack.c.bf16 %v363_v59, %v362_v58  ;;  %v364_v6 = vld [vmem:[%s2293_s1 + $0xe0] sm:$0xff] }
  0x19   : > { %1530 = vmatprep.subr.bf16.mxu1 %v1529_v43  ;;  %v346_v1 = vld [vmem:[%s2293_s1 + $0x50] sm:$0xff]  ;;  %v347_v2 = vld [vmem:[%s2293_s1 + $0x58] sm:$0xff]  ;;  %v1537_v4 = vpack.c.bf16 %v395_v61, %v394_v60  ;;  %v365_v7 = vld [vmem:[%s2293_s1 + $0xe8] sm:$0xff] }
  0x1a   : > { %1500 = vmatpush3.bf16.msra.mxu0 %v1499_v48  ;;  %v378_v3 = vld [vmem:[%s2293_s1 + $0x150] sm:$0xff]  ;;  %v379_v5 = vld [vmem:[%s2293_s1 + $0x158] sm:$0xff]  ;;  %v396_v8 = vld [vmem:[%s2293_s1 + $0x1e0] sm:$0xff]  ;;  %v1507_v10 = vpack.c.bf16 %v347_v2, %v346_v1  ;;  %v1509_v14 = vpack.c.bf16 %v365_v7, %v364_v6 }
  0x1b   : > { %1502 = vmatprep.subr.bf16.mxu0 %v1501_v52  ;;  %v397_v9 = vld [vmem:[%s2293_s1 + $0x1e8] sm:$0xff]  ;;  %v348_v11 = vld [vmem:[%s2293_s1 + $0x60] sm:$0xff]  ;;  %v1539_v13 = vpack.c.bf16 %v379_v5, %v378_v3  ;;  %v366_v19 = vld [vmem:[%s2293_s1 + $0xf0] sm:$0xff] }
  0x1c   : > { %1532 = vmatpush3.bf16.msra.mxu1 %v1531_v51  ;;  %v309_v12 = vld [vmem:[%s2001_s14 + $0x8] sm:$0xff]  ;;  %v380_v16 = vld [vmem:[%s2293_s1 + $0x160] sm:$0xff]  ;;  %v1541_v18 = vpack.c.bf16 %v397_v9, %v396_v8  ;;  %v367_v20 = vld [vmem:[%s2293_s1 + $0xf8] sm:$0xff] }
  0x1d   : > { %1534 = vmatprep.subr.bf16.mxu1 %v1533_v56  ;;  %v349_v15 = vld [vmem:[%s2293_s1 + $0x68] sm:$0xff]  ;;  %518 = vmatprep.mubr.f32.mxu0 %v309_v12  ;;  %v311_v21 = vld [vmem:[%s2001_s14 + $0x18] sm:$0xff]  ;;  %v398_v22 = vld [vmem:[%s2293_s1 + $0x1f0] sm:$0xff]  ;;  %v1513_v26 = vpack.c.bf16 %v367_v20, %v366_v19 }
  0x1e   : > { %1504 = vmatpush3.bf16.msra.mxu0 %v1503_v62  ;;  %v381_v17 = vld [vmem:[%s2293_s1 + $0x168] sm:$0xff]  ;;  %v399_v23 = vld [vmem:[%s2293_s1 + $0x1f8] sm:$0xff]  ;;  %603 = vmatprep.mubr.f32.mxu1 %v311_v21  ;;  %v1511_v24 = vpack.c.bf16 %v349_v15, %v348_v11  ;;  %v350_v27 = vld [vmem:[%s2293_s1 + $0x70] sm:$0xff] }
  0x1f   : > { %1506 = vmatprep.subr.bf16.mxu0 %v1505_v0  ;;  %v1543_v25 = vpack.c.bf16 %v381_v17, %v380_v16  ;;  %v351_v28 = vld [vmem:[%s2293_s1 + $0x78] sm:$0xff]  ;;  %v382_v29 = vld [vmem:[%s2293_s1 + $0x170] sm:$0xff]  ;;  %v1545_v30 = vpack.c.bf16 %v399_v23, %v398_v22  ;;  %v416_v32 = vld [vmem:[%s2293_s1 + $0x280] sm:$0xff] }
  0x20   : > { %1536 = vmatpush3.bf16.msra.mxu1 %v1535_v63  ;;  %v383_v31 = vld [vmem:[%s2293_s1 + $0x178] sm:$0xff]  ;;  %v417_v33 = vld [vmem:[%s2293_s1 + $0x288] sm:$0xff]  ;;  %v1515_v34 = vpack.c.bf16 %v351_v28, %v350_v27  ;;  %v400_v37 = vld [vmem:[%s2293_s1 + $0x200] sm:$0xff] }
  0x21   : > { %1538 = vmatprep.subr.bf16.mxu1 %v1537_v4  ;;  %v1547_v35 = vpack.c.bf16 %v383_v31, %v382_v29  ;;  %v1549_v36 = vpack.c.bf16 %v417_v33, %v416_v32  ;;  %v401_v38 = vld [vmem:[%s2293_s1 + $0x208] sm:$0xff]  ;;  %v418_v39 = vld [vmem:[%s2293_s1 + $0x290] sm:$0xff]  ;;  %v419_v40 = vld [vmem:[%s2293_s1 + $0x298] sm:$0xff] }
  0x22   : > { %1508 = vmatpush3.bf16.msra.mxu0 %v1507_v10  ;;  %v308_v41 = vld [vmem:[%s2001_s14] sm:$0xff]  ;;  %v1551_v42 = vpack.c.bf16 %v401_v38, %v400_v37  ;;  %v310_v43 = vld [vmem:[%s2001_s14 + $0x10] sm:$0xff]  ;;  %v1553_v44 = vpack.c.bf16 %v419_v40, %v418_v39  ;;  %v403_v46 = vld [vmem:[%s2293_s1 + $0x218] sm:$0xff] }
  0x23   : > { %1510 = vmatprep.subr.bf16.mxu0 %v1509_v14  ;;  %v402_v45 = vld [vmem:[%s2293_s1 + $0x210] sm:$0xff]  ;;  %v420_v47 = vld [vmem:[%s2293_s1 + $0x2a0] sm:$0xff]  ;;  %v421_v48 = vld [vmem:[%s2293_s1 + $0x2a8] sm:$0xff] }
  0x24   : > { %1540 = vmatpush3.bf16.msra.mxu1 %v1539_v13  ;;  %v316_v49 = vld [vmem:[%s2001_s14 + $0x40] sm:$0xff]  ;;  %v318_v50 = vld [vmem:[%s2001_s14 + $0x50] sm:$0xff]  ;;  %v433_v52 = vld [vmem:[%s2293_s1 + $0x308] sm:$0xff]  ;;  %v1555_v53 = vpack.c.bf16 %v403_v46, %v402_v45  ;;  %v1557_v56 = vpack.c.bf16 %v421_v48, %v420_v47 }
  0x25   : > { %1542 = vmatprep.subr.bf16.mxu1 %v1541_v18  ;;  %v432_v51 = vld [vmem:[%s2293_s1 + $0x300] sm:$0xff]  ;;  %v315_v54 = vld [vmem:[%s2001_s14 + $0x38] sm:$0xff]  ;;  %v405_v58 = vld [vmem:[%s2293_s1 + $0x228] sm:$0xff] }
  0x26   : > { %1512 = vmatpush3.bf16.msra.mxu0 %v1511_v24  ;;  %v1581_v55 = vpack.c.bf16 %v433_v52, %v432_v51  ;;  %v404_v57 = vld [vmem:[%s2293_s1 + $0x220] sm:$0xff]  ;;  %v317_v59 = vld [vmem:[%s2001_s14 + $0x48] sm:$0xff]  ;;  %v422_v60 = vld [vmem:[%s2293_s1 + $0x2b0] sm:$0xff] }
  0x27   : > { %1514 = vmatprep.subr.bf16.mxu0 %v1513_v26  ;;  %v423_v61 = vld [vmem:[%s2293_s1 + $0x2b8] sm:$0xff]  ;;  %v325_v63 = vld [vmem:[%s2001_s14 + $0x88] sm:$0xff]  ;;  %v1559_v0 = vpack.c.bf16 %v405_v58, %v404_v57  ;;  %v322_v1 = vld [vmem:[%s2001_s14 + $0x70] sm:$0xff] }
  0x28   : > { %1544 = vmatpush3.bf16.msra.mxu1 %v1543_v25  ;;  %v323_v62 = vld [vmem:[%s2001_s14 + $0x78] sm:$0xff]  ;;  %v1561_v2 = vpack.c.bf16 %v423_v61, %v422_v60  ;;  %v406_v3 = vld [vmem:[%s2293_s1 + $0x230] sm:$0xff]  ;;  %v324_v5 = vld [vmem:[%s2001_s14 + $0x80] sm:$0xff] }
  0x29   : > { %1546 = vmatprep.subr.bf16.mxu1 %v1545_v30  ;;  %v407_v4 = vld [vmem:[%s2293_s1 + $0x238] sm:$0xff]  ;;  %v424_v6 = vld [vmem:[%s2293_s1 + $0x2c0] sm:$0xff]  ;;  %v425_v7 = vld [vmem:[%s2293_s1 + $0x2c8] sm:$0xff] }
  0x2a   : > { %1516 = vmatpush3.bf16.msra.mxu0 %v1515_v34  ;;  %v330_v8 = vld [vmem:[%s2001_s14 + $0xb0] sm:$0xff]  ;;  %v332_v9 = vld [vmem:[%s2001_s14 + $0xc0] sm:$0xff]  ;;  %v1563_v10 = vpack.c.bf16 %v407_v4, %v406_v3  ;;  %v329_v11 = vld [vmem:[%s2001_s14 + $0xa8] sm:$0xff]  ;;  %v1565_v12 = vpack.c.bf16 %v425_v7, %v424_v6 }
  0x2b   : > { %1550 = vmatprep.subr.bf16.mxu0 %v1549_v36  ;;  %v408_v13 = vld [vmem:[%s2293_s1 + $0x240] sm:$0xff]  ;;  %v409_v14 = vld [vmem:[%s2293_s1 + $0x248] sm:$0xff]  ;;  %v331_v15 = vld [vmem:[%s2001_s14 + $0xb8] sm:$0xff] }
  0x2c   : > { %1548 = vmatpush3.bf16.msra.mxu1 %v1547_v35  ;;  %v426_v16 = vld [vmem:[%s2293_s1 + $0x2d0] sm:$0xff]  ;;  %v427_v17 = vld [vmem:[%s2293_s1 + $0x2d8] sm:$0xff]  ;;  %v313_v18 = vld [vmem:[%s2001_s14 + $0x28] sm:$0xff]  ;;  %v1567_v20 = vpack.c.bf16 %v409_v14, %v408_v13 }
  0x2d   : > { %519 = vmatmul.mubr.f32.vlgmr.msra.gmra.mrb[0].mxu0 %v308_v41  ;;  %1582 = vmatprep.subr.bf16.mxu1 %v1581_v55  ;;  %v314_v19 = vld [vmem:[%s2001_s14 + $0x30] sm:$0xff]  ;;  %v1569_v21 = vpack.c.bf16 %v427_v17, %v426_v16  ;;  %v411_v23 = vld [vmem:[%s2293_s1 + $0x258] sm:$0xff]  ;;  %v321_v24 = vld [vmem:[%s2001_s14 + $0x68] sm:$0xff] }
  0x2e   : > { %1552 = vmatpush3.bf16.msra.mxu0 %v1551_v42  ;;  %523 = vmatprep.mubr.f32.mxu0 %v316_v49  ;;  %v410_v22 = vld [vmem:[%s2293_s1 + $0x250] sm:$0xff]  ;;  %v428_v25 = vld [vmem:[%s2293_s1 + $0x2e0] sm:$0xff]  ;;  %v429_v26 = vld [vmem:[%s2293_s1 + $0x2e8] sm:$0xff] }
  0x2f   : > { %604 = vmatmul.mubr.f32.vlgmr.msra.gmra.mrb[0].mxu1 %v310_v43  ;;  %1554 = vmatprep.subr.bf16.mxu0 %v1553_v44  ;;  %v328_v27 = vld [vmem:[%s2001_s14 + $0xa0] sm:$0xff]  ;;  %v1571_v28 = vpack.c.bf16 %v411_v23, %v410_v22  ;;  %v1573_v29 = vpack.c.bf16 %v429_v26, %v428_v25  ;;  %v413_v31 = vld [vmem:[%s2293_s1 + $0x268] sm:$0xff]  ;;  %v335_v32 = vld [vmem:[%s2001_s14 + $0xd8] sm:$0xff] }
  0x30   : > { %608 = vmatprep.mubr.f32.mxu1 %v318_v50  ;;  %1584 = vmatpush3.bf16.msra.mxu1 %v1581_v55  ;;  %v412_v30 = vld [vmem:[%s2293_s1 + $0x260] sm:$0xff]  ;;  %v430_v33 = vld [vmem:[%s2293_s1 + $0x2f0] sm:$0xff]  ;;  %v431_v34 = vld [vmem:[%s2293_s1 + $0x2f8] sm:$0xff] }
  0x31   : > { %524 = vmatmul.mubr.f32.gmra.mrb[2].mxu0 %v315_v54  ;;  %v1575_v35 = vpack.c.bf16 %v413_v31, %v412_v30  ;;  %v1577_v36 = vpack.c.bf16 %v431_v34, %v430_v33  ;;  %v414_v37 = vld [vmem:[%s2293_s1 + $0x270] sm:$0xff]  ;;  %v415_v38 = vld [vmem:[%s2293_s1 + $0x278] sm:$0xff]  ;;  %v312_v40 = vld [vmem:[%s2001_s14 + $0x20] sm:$0xff] }
  0x32   : > { %1556 = vmatpush3.bf16.msra.mxu0 %v1555_v53  ;;  %528 = vmatprep.mubr.f32.mxu0 %v323_v62  ;;  %v1579_v39 = vpack.c.bf16 %v415_v38, %v414_v37  ;;  %v320_v41 = vld [vmem:[%s2001_s14 + $0x60] sm:$0xff]  ;;  %v319_v42 = vld [vmem:[%s2001_s14 + $0x58] sm:$0xff]  ;;  %v326_v44 = vld [vmem:[%s2001_s14 + $0x90] sm:$0xff] }
  0x33   : > { %609 = vmatmul.mubr.f32.gmra.mrb[2].mxu1 %v317_v59  ;;  %1558 = vmatprep.subr.bf16.mxu0 %v1557_v56  ;;  %v327_v43 = vld [vmem:[%s2001_s14 + $0x98] sm:$0xff]  ;;  %v334_v45 = vld [vmem:[%s2001_s14 + $0xd0] sm:$0xff]  ;;  %v333_v46 = vld [vmem:[%s2001_s14 + $0xc8] sm:$0xff]  ;;  %s2230_s14 = scalar_lea.vmem [#allocation2], %s1255_s17  }
  0x34   : > { %613 = vmatprep.mubr.f32.mxu1 %v325_v63  ;;  %v798_v47 = vld [vmem:[%s2295_s3] sm:$0xff]  ;;  %v799_v48 = vld [vmem:[%s2295_s3 + $0x8] sm:$0xff]  ;;  %v800_v50 = vld [vmem:[%s2295_s3 + $0x10] sm:$0xff] }
  0x35   : > { %529 = vmatmul.mubr.f32.gmra.mrb[4].mxu0 %v322_v1  ;;  %v1585_v49 = vpack.c.bf16 %v799_v48, %v798_v47  ;;  %v801_v51 = vld [vmem:[%s2295_s3 + $0x18] sm:$0xff]  ;;  %v911_v53 = vld [vmem:[%s2297_s5] sm:$0xff]  ;;  %v912_v54 = vld [vmem:[%s2297_s5 + $0x8] sm:$0xff] }
  0x36   : > { %1560 = vmatpush3.bf16.msra.mxu0 %v1559_v0  ;;  %533 = vmatprep.mubr.f32.mxu0 %v330_v8  ;;  %v1589_v52 = vpack.c.bf16 %v801_v51, %v800_v50  ;;  %v1593_v55 = vpack.c.bf16 %v912_v54, %v911_v53  ;;  %v1258_v57 = vld [vmem:[%s2294_s2] ss:$0 sm:$0xff]  ;;  %v913_v53 = vld [vmem:[%s2297_s5 + $0x10] sm:$0xff]  ;;  %v914_v54 = vld [vmem:[%s2297_s5 + $0x18] sm:$0xff] }
  0x37   : > { %614 = vmatmul.mubr.f32.gmra.mrb[4].mxu1 %v324_v5  ;;  %1562 = vmatprep.subr.bf16.mxu0 %v1561_v2 }
  0x38   : > { %618 = vmatprep.mubr.f32.mxu1 %v332_v9  ;;  %1586 = vmatprep.subr.bf16.mxu1 %v1585_v49 }
  0x39   : > { %534 = vmatmul.mubr.f32.gmra.mrb[6].mxu0 %v329_v11 }
  0x3a   : > { %1564 = vmatpush3.bf16.msra.mxu0 %v1563_v10  ;;  %688 = vmatprep.mubr.f32.mxu0 %v313_v18 }
  0x3b   : > { %619 = vmatmul.mubr.f32.gmra.mrb[6].mxu1 %v331_v15  ;;  %1566 = vmatprep.subr.bf16.mxu0 %v1565_v12 }
  0x3c   : > { %1451 = vmatprep.mubr.msk.f32.mxu1 %vm441_vm0, %v314_v19 }
  0x3e   : > { %1568 = vmatpush3.bf16.msra.mxu0 %v1567_v20 }
  0x3f   : > { %1452 = vmatmul.mubr.msk.f32.vlgmr.msra.gmra.mrb[8].mxu1 %vm441_vm0, %v321_v24  ;;  %1570 = vmatprep.subr.bf16.mxu0 %v1569_v21 }
  0x40   : > { %1454 = vmatprep.mubr.msk.f32.mxu1 %vm441_vm0, %v328_v27  ;;  %1588 = vmatpush3.bf16.msra.mxu1 %v1585_v49 }
  0x41   : > { %1590 = vmatprep.subr.bf16.mxu1 %v1589_v52 }
  0x42   : > { %1572 = vmatpush3.bf16.msra.mxu0 %v1571_v28 }
  0x43   : > { %1455 = vmatmul.mubr.msk.f32.gmra.mrb[10].mxu1 %vm441_vm0, %v335_v32  ;;  %1574 = vmatprep.subr.bf16.mxu0 %v1573_v29 }
  0x44   : > { %1592 = vmatpush3.bf16.msra.mxu1 %v1589_v52 }
  0x45   : > { %1594 = vmatprep.subr.bf16.mxu1 %v1593_v55 }
  0x46   : > { %1576 = vmatpush3.bf16.msra.mxu0 %v1575_v35 }
  0x47   : > { %1578 = vmatprep.subr.bf16.mxu0 %v1577_v36 }
  0x4a   : > { %1580 = vmatpush3.bf16.msra.mxu0 %v1579_v39 }
  0x4d   : > { %689 = vmatmul.mubr.f32.vlgmr.msra.gmra.mrb[8].mxu0 %v312_v40 }
  0x4e   : > { %693 = vmatprep.mubr.f32.mxu0 %v320_v41 }
  0x51   : > { %694 = vmatmul.mubr.f32.gmra.mrb[10].mxu0 %v319_v42 }
  0x52   : > { %698 = vmatprep.mubr.f32.mxu0 %v327_v43 }
  0x55   : > { %699 = vmatmul.mubr.f32.gmra.mrb[12].mxu0 %v326_v44 }
  0x56   : > { %703 = vmatprep.mubr.f32.mxu0 %v334_v45 }
  0x59   : > { %704 = vmatmul.mubr.f32.gmra.mrb[14].mxu0 %v333_v46 }
 0x100   : > { %v1325_v56 = vpop.f32.mrb[0].mxu0 }
 0x101   : > { %v1326_v58 = vpop.f32.mrb[1].mxu0 }
 0x102   : > { %v1369_v59 = vpop.f32.mrb[0].mxu1  ;;  %v1327_v60 = vadd.f32 %v1326_v58, %v1325_v56  ;;  %v1597_v56 = vpack.c.bf16 %v914_v54, %v913_v53 }
 0x103   : > { %v1370_v61 = vpop.f32.mrb[1].mxu1 }
 0x104   : > { %v1371_v62 = vadd.f32 %v1370_v61, %v1369_v59  ;;  %v521_v63 = vadd.f32 %v1327_v60, %v1258_v57  ;;  %v1328_v0 = vpop.f32.mrb[2].mxu0 }
 0x105   : > { %v1329_v1 = vpop.f32.mrb[3].mxu0 }
 0x106   : > { %v1372_v2 = vpop.f32.mrb[2].mxu1  ;;  %v606_v3 = vadd.f32 %v1371_v62, %v521_v63  ;;  %v1330_v4 = vadd.f32 %v1329_v1, %v1328_v0 }
 0x107   : > { %v1373_v5 = vpop.f32.mrb[3].mxu1 }
 0x108   : > { %v1374_v6 = vadd.f32 %v1373_v5, %v1372_v2  ;;  %v526_v7 = vadd.f32 %v1330_v4, %v1258_v57  ;;  %v1331_v8 = vpop.f32.mrb[4].mxu0  ;;  %v1268_v5 = vld [vmem:[%s2298_s6] ss:$0 sm:$0xff] }
 0x109   : > { %v1332_v9 = vpop.f32.mrb[5].mxu0 }
 0x10a   : > { %v1375_v10 = vpop.f32.mrb[4].mxu1  ;;  %v611_v11 = vadd.f32 %v1374_v6, %v526_v7  ;;  %v1333_v12 = vadd.f32 %v1332_v9, %v1331_v8 }
 0x10b   : > { %v1376_v13 = vpop.f32.mrb[5].mxu1 }
 0x10c   : > { %v1377_v14 = vadd.f32 %v1376_v13, %v1375_v10  ;;  %v531_v15 = vadd.f32 %v1333_v12, %v1258_v57  ;;  %v1334_v16 = vpop.f32.mrb[6].mxu0 }
 0x10d   : > { %v1335_v17 = vpop.f32.mrb[7].mxu0 }
 0x10e   : > { %v1378_v18 = vpop.f32.mrb[6].mxu1  ;;  %v616_v19 = vadd.f32 %v1377_v14, %v531_v15  ;;  %v1336_v20 = vadd.f32 %v1335_v17, %v1334_v16 }
 0x10f   : > { %v1379_v21 = vpop.f32.mrb[7].mxu1 }
 0x110   : > { %v1380_v22 = vadd.f32 %v1379_v21, %v1378_v18  ;;  %v536_v23 = vadd.f32 %v1336_v20, %v1258_v57 }
 0x112   : > { %v1453_v24 = vpop.f32.mrb[8].mxu1  ;;  %v621_v25 = vadd.f32 %v1380_v22, %v536_v23 }
 0x113   : > { %v775_v26 = vpop.f32.mrb[9].mxu1 }
 0x116   : > { %v1456_v27 = vpop.f32.mrb[10].mxu1 }
 0x117   : > { %v785_v28 = vpop.f32.mrb[11].mxu1 }
 0x120   : > { %v1413_v29 = vpop.f32.mrb[8].mxu0 }
 0x121   : > { %v1414_v30 = vpop.f32.mrb[9].mxu0 }
 0x122   : > { %v1415_v31 = vadd.f32 %v1414_v30, %v1413_v29 }
 0x124   : > { %v1416_v32 = vpop.f32.mrb[10].mxu0  ;;  %v691_v33 = vadd.f32 %v1415_v31, %v606_v3 }
 0x125   : > { %v1417_v34 = vpop.f32.mrb[11].mxu0 }
 0x126   : > { %v1418_v35 = vadd.f32 %v1417_v34, %v1416_v32  ;;  %v776_v36 = vadd.f32 %v775_v26, %v691_v33 }
 0x128   : > { %v696_v37 = vadd.f32 %v1418_v35, %v611_v11  ;;  %v794_v38 = vmax.f32 %v776_v36, 0.0  ;;  %v1419_v39 = vpop.f32.mrb[12].mxu0 }
 0x129   : > { %v1420_v40 = vpop.f32.mrb[13].mxu0 }
 0x12a   : > { %v781_v41 = vadd.f32 %v1453_v24, %v696_v37  ;;  %v1421_v42 = vadd.f32 %v1420_v40, %v1419_v39  ;;  %1465 = vmatprep.mubr.msk.f32.mxu1 %vm809_vm1, %v794_v38 }
 0x12c   : > { %v795_v43 = vmax.f32 %v781_v41, 0.0  ;;  %v1422_v44 = vpop.f32.mrb[14].mxu0  ;;  %v701_v45 = vadd.f32 %v1421_v42, %v616_v19 }
 0x12d   : > { %v1423_v46 = vpop.f32.mrb[15].mxu0 }
 0x12e   : > { %v1424_v47 = vadd.f32 %v1423_v46, %v1422_v44  ;;  %v786_v48 = vadd.f32 %v785_v28, %v701_v45  ;;  %1466 = vmatmul.mubr.msk.f32.vlgmr.msra.gmra.mrb[12].mxu1 %vm809_vm1, %v795_v43 }
 0x12f   : > { %1596 = vmatpush3.bf16.msra.mxu1 %v1593_v55  ;;  %v1263_v55 = vld [vmem:[%s2296_s4] ss:$0 sm:$0xff] }
 0x130   : > { %v706_v49 = vadd.f32 %v1424_v47, %v621_v25  ;;  %v796_v50 = vmax.f32 %v786_v48, 0.0  ;;  %1598 = vmatprep.subr.bf16.mxu1 %v1597_v56 }
 0x132   : > { %v791_v51 = vadd.f32 %v1456_v27, %v706_v49  ;;  %1468 = vmatprep.mubr.msk.f32.mxu1 %vm809_vm1, %v796_v50 }
 0x133   : > { %1600 = vmatpush3.bf16.msra.mxu1 %v1597_v56 }
 0x134   : > { %v797_v52 = vmax.f32 %v791_v51, 0.0 }
 0x136   : > { %1469 = vmatmul.mubr.msk.f32.gmra.mrb[14].mxu1 %vm809_vm1, %v797_v52 }
 0x201   : > { %v1467_v57 = vpop.f32.mrb[12].mxu1 }
 0x202   : > { %v894_v58 = vadd.f32 %v1467_v57, %v1263_v55  ;;  %v888_v59 = vpop.f32.mrb[13].mxu1 }
 0x203   : > { %v889_v60 = vadd.f32 %v1263_v55, %v888_v59 }
 0x204   : > { %v908_v62 = vmax.f32 %v894_v58, 0.0 }
 0x205   : > { %v907_v61 = vmax.f32 %v889_v60, 0.0 }
 0x207   : > { %1479 = vmatprep.mubr.msk.f32.mxu1 %vm809_vm1, %v907_v61 }
 0x208   : > { %1480 = vmatmul.mubr.msk.f32.vlgmr.msra.gmra.mrb[16].mxu1 %vm809_vm1, %v908_v62 }
 0x209   : > { %v1470_v63 = vpop.f32.mrb[14].mxu1 }
 0x20a   : > { %v904_v0 = vadd.f32 %v1470_v63, %v1263_v55  ;;  %v898_v1 = vpop.f32.mrb[15].mxu1 }
 0x20b   : > { %v899_v2 = vadd.f32 %v1263_v55, %v898_v1 }
 0x20c   : > { %v910_v4 = vmax.f32 %v904_v0, 0.0 }
 0x20d   : > { %v909_v3 = vmax.f32 %v899_v2, 0.0 }
 0x20f   : > { %1482 = vmatprep.mubr.msk.f32.mxu1 %vm809_vm1, %v909_v3 }
 0x210   : > { %1483 = vmatmul.mubr.msk.f32.gmra.mrb[18].mxu1 %vm809_vm1, %v910_v4 }
 0x2db   : > { %v1481_v6 = vpop.f32.mrb[16].mxu1 }
 0x2dc   : > { %v1006_v7 = vadd.f32 %v1481_v6, %v1268_v5  ;;  %v1000_v8 = vpop.f32.mrb[17].mxu1 }
 0x2dd   : > { %v1001_v9 = vadd.f32 %v1268_v5, %v1000_v8 }
 0x2de   : > { %1021 = vst.msk [vmem:[%s2230_s14 + $0x8] sm:$0xff] %vm1019_vm2, %v1006_v7 }
 0x2df   : > { %1020 = vst.msk [vmem:[%s2230_s14] sm:$0xff] %vm1019_vm2, %v1001_v9 }
 0x2e1   : > { %1030 = sbr.rel (!%p1843_p4) target bundleno = 793 (0x319), region = 52 }
 0x2e3   : > { %v1484_v10 = vpop.f32.mrb[18].mxu1 }
 0x2e4   : > { %v1016_v11 = vadd.f32 %v1484_v10, %v1268_v5  ;;  %v1010_v12 = vpop.f32.mrb[19].mxu1 }
 0x2e5   : > { %v1011_v13 = vadd.f32 %v1268_v5, %v1010_v12 }
 0x2e6   : > { %1023 = vst.msk [vmem:[%s2230_s14 + $0x18] sm:$0xff] %vm1019_vm2, %v1016_v11 }
 0x2e7   : > { %1022 = vst.msk [vmem:[%s2230_s14 + $0x10] sm:$0xff] %vm1019_vm2, %v1011_v13 }
 0x2e8   : > { %s2308_s24 = smov (!%p1033_p8, %s1032_s24), 4 }
 0x2e9   : > { %s1275_s23 = sshll.u32 %s2308_s24, 7 }
 0x2ea   : > { %p1278_p9 = scmp.eq.s32.totalorder %s1275_s23, 0 }
 0x2eb   : > { %s2249_s26 = sshrl.u32 (!%p1278_p9), %s2308_s24, 2 }
 0x2ec   : > { %1041 = sbr.rel (%p1278_p9) target bundleno = 793 (0x319), region = 56  ;;  %p1279_p10 = scmp.le.s32.totalorder (!%p1278_p9), %s2249_s26, 0 }
 0x2f3   : > { %1207 = sbr.rel (%p1279_p10) target bundleno = 772 (0x304), region = 132  ;;  %s2301_s27 = smov (!%p1279_p10), %s2243_s30 }
 0x2f4   : > { %s2302_s9 = smov (!%p1279_p10), %s2230_s14  ;;  %s2258_s11 = smov (!%p1279_p10), 0  }
 0x2f5   : > { %s1758_s29 = smov (!%p1279_p10), 0  }
 0x2fa LB: >> { %v1109_v14 = vld [vmem:[%s1752_s9] sm:$0xff]  ;;  %v1111_v15 = vld [vmem:[%s1752_s9 + $0x8] sm:$0xff]  ;;  %v1113_v16 = vld [vmem:[%s1752_s9 + $0x10] sm:$0xff]  ;;  %s1117_s10 = sadd.s32 1, %s1756_s11  ;;  %s1103_s29 = sadd.s32 1, %s1760_s29   ;;  %s1760_s29 = sphi %s1758_s29, %s1103_s29   ;;  %s1756_s11 = sphi %s2258_s11, %s2303_s11   ;;  %s1752_s9 = sphi %s2302_s9, %s1122_s9   ;;  %s1748_s27 = sphi %s2301_s27, %s1123_s27  }
 0x2fb   : >> { %1110 = vst [vmem:[%s1748_s27] sm:$0xff] %v1109_v14  ;;  %1112 = vst [vmem:[%s1748_s27 + $0x8] sm:$0xff] %v1111_v15  ;;  %v1115_v17 = vld [vmem:[%s1752_s9 + $0x18] sm:$0xff]  ;;  %p1118_p11 = scmp.ge.s32.totalorder %s1117_s10, %s2249_s26  ;;  %p1102_p12 = scmp.ge.s32.totalorder %s1103_s29, %s2249_s26 }
 0x2fc   : >> { %1114 = vst [vmem:[%s1748_s27 + $0x10] sm:$0xff] %v1113_v16  ;;  %1116 = vst [vmem:[%s1748_s27 + $0x18] sm:$0xff] %v1115_v17 }
 0x2fd   : >> { %s2310_s10 = smov (%p1118_p11, %s1117_s10), 0  ;;  %1105 = sbr.rel (!%p1102_p12) target bundleno = 762 (0x2fa), region = 138 }
 0x2fe   : >> { %s1280_s12 = sshll.u32 %s2310_s10, 5  ;;  %s2303_s11 = smov %s2310_s10 }
 0x2ff   : >> { %s1122_s9 = scalar_lea.vmem %s2230_s14, %s1280_s12 [#allocation2]   ;;  %s1123_s27 = scalar_lea.vmem %s2243_s30, %s1280_s12  }
 0x304 PF: > { %s2274_s13 = sand.u32 3, %s2308_s24   ;;  %s1291_s15 = sshll.u32 %s2249_s26, 5 }
 0x305   : > { %s1128_s16 = scalar_lea.vmem %s2230_s14, %s1291_s15 [#allocation2]   ;;  %s1130_s17 = scalar_lea.vmem %s2243_s30, %s1291_s15  }
 0x306   : > { %p1285_p13 = scmp.le.s32.totalorder %s2274_s13, 0 }
 0x307   : > { %s1762_s18 = smov (!%p1285_p13), %s1130_s17   ;;  %s1766_s19 = smov (!%p1285_p13), %s1128_s16  }
 0x308   : > { %1221 = sbr.rel (%p1285_p13) target bundleno = 793 (0x319), region = 143  ;;  %s1770_s22 = smov (!%p1285_p13), 0  }
 0x309   : > { %s1774_s20 = smov (!%p1285_p13), 0  }
 0x30f LB: >> { %v1140_v18 = vld [vmem:[%s1768_s19] sm:$0xff]  ;;  %s1142_s24 = sadd.s32 1, %s1772_s22  ;;  %s1134_s20 = sadd.s32 1, %s1776_s20   ;;  %s1776_s20 = sphi %s1774_s20, %s1134_s20   ;;  %s1772_s22 = sphi %s1770_s22, %s1771_s22   ;;  %s1768_s19 = sphi %s1766_s19, %s1147_s19   ;;  %s1764_s18 = sphi %s1762_s18, %s1148_s18  }
 0x310   : >> { %1141 = vst [vmem:[%s1764_s18] sm:$0xff] %v1140_v18  ;;  %p1143_p0 = scmp.ge.s32.totalorder %s1142_s24, %s2274_s13  ;;  %p1133_p1 = scmp.ge.s32.totalorder %s1134_s20, %s2274_s13 }
 0x312   : >> { %s2312_s24 = smov (%p1143_p0, %s1142_s24), 0  ;;  %1136 = sbr.rel (!%p1133_p1) target bundleno = 783 (0x30f), region = 149 }
 0x313   : >> { %s1286_s14 = sshll.u32 %s2312_s24, 3  ;;  %s1771_s22 = smov %s2312_s24  }
 0x314   : >> { %s1147_s19 = scalar_lea.vmem %s1128_s16, %s1286_s14 [#allocation2]   ;;  %s1148_s18 = scalar_lea.vmem %s1130_s17, %s1286_s14  }
 0x319 PF: > { %p14_p2 = scmp.ge.s32.totalorder %s1833_s28, 5   ;;  %s2304_s24 = smov %s1740_s25 }
 0x31a   : > { %s2305_s25 = smov %s1841_s8  ;;  %s2306_s26 = smov %s1833_s28 }
 0x31b   :  { %16 = sbr.rel (!%p14_p2) target bundleno = 2 (0x2), region = 160 }

</bundles_post_ra>
